<compile_context>
chip_gen: v7x
topology: tpu7x:2x2x1
jax: 0.10.0
libtpu: 0.0.40
codegen_flags: <defaults>
</compile_context>

<pallas_src>
import math

import jax
import jax.numpy as jnp
from jax.experimental import pallas as pl
from jax.experimental.pallas import tpu as pltpu

BN_EPS = 1e-5


def _make_mlp_kernel(num_hidden: int):
    """Kernel for an MLP with `num_hidden` (Linear + BN + ReLU) blocks + final Linear."""

    def kernel(*refs):
        # Inputs : x, then per hidden layer (W_bf16, [b;gamma;beta]), then W_out_bf16, b_out.
        # Outputs: one embedding per Linear layer; the last one doubles as the final output.
        n_in = 1 + 2 * num_hidden + 2
        in_refs = refs[:n_in]
        emb_refs = refs[n_in:]

        x_ref = in_refs[0]
        batch = x_ref.shape[0]
        inv_b = 1.0 / float(batch)

        # MXU operands in bf16; accumulation, BN and ReLU stay in f32.
        h = x_ref[...].astype(jnp.bfloat16)

        # Hoisted once: row of ones used for MXU-based batch reductions.
        ones_row = jnp.ones((1, batch), jnp.float32)

        idx = 1
        for i in range(num_hidden):
            w = in_refs[idx][...]          # bf16 (in_dim, hid)
            bgb = in_refs[idx + 1][...]    # f32  (3, hid): bias, gamma, beta
            idx += 2
            b = bgb[0:1, :]
            gamma = bgb[1:2, :]
            beta = bgb[2:3, :]

            # Linear on the MXU. Bias is deferred: it cancels exactly in (z - mean).
            z = jnp.dot(h, w, preferred_element_type=jnp.float32)

            # embeddings[f'layer_{i}'] = Linear output (with bias), pre-BN / pre-ReLU.
            emb_refs[i][...] = z + b

            # Single-pass batch statistics on the MXU (sum and sum-of-squares).
            s1 = jnp.dot(ones_row, z, preferred_element_type=jnp.float32)
            s2 = jnp.dot(ones_row, z * z, preferred_element_type=jnp.float32)
            mean = s1 * inv_b
            var = jnp.maximum(s2 * inv_b - mean * mean, 0.0)

            # BatchNorm1d (training mode, biased variance) + affine + ReLU, all f32.
            z_hat = (z - mean) * jax.lax.rsqrt(var + BN_EPS)
            h = jnp.maximum(z_hat * gamma + beta, 0.0).astype(jnp.bfloat16)

        # Final Linear (no BN / ReLU). Single store: this embedding is also the output.
        w = in_refs[idx][...]
        b = in_refs[idx + 1][...]
        emb_refs[num_hidden][...] = (
            jnp.dot(h, w, preferred_element_type=jnp.float32) + b
        )

    return kernel


def init_mlp_params(key, in_channels, hidden_channels, out_channels):
    """Deterministic parameter init (shapes mirror the PyTorch module, W pre-transposed)."""
    params = []
    input_dim = in_channels
    for hidden_dim in hidden_channels:
        key, kw, kb = jax.random.split(key, 3)
        bound = 1.0 / jnp.sqrt(jnp.float32(input_dim))
        w = jax.random.uniform(kw, (input_dim, hidden_dim), jnp.float32, -bound, bound)
        b = jax.random.uniform(kb, (1, hidden_dim), jnp.float32, -bound, bound)
        gamma = jnp.ones((1, hidden_dim), jnp.float32)
        beta = jnp.zeros((1, hidden_dim), jnp.float32)
        params.append(("hidden", w, b, gamma, beta))
        input_dim = hidden_dim
    key, kw, kb = jax.random.split(key, 3)
    bound = 1.0 / jnp.sqrt(jnp.float32(input_dim))
    w = jax.random.uniform(kw, (input_dim, out_channels), jnp.float32, -bound, bound)
    b = jax.random.uniform(kb, (1, out_channels), jnp.float32, -bound, bound)
    params.append(("out", w, b))
    return params


def mlp_forward(x, params):
    """Runs the whole MLP in one Pallas kernel; returns (out, embeddings dict)."""
    num_hidden = sum(1 for p in params if p[0] == "hidden")
    batch = x.shape[0]

    # Flatten kernel inputs: bf16 weights + one packed (3, N) vector block per hidden layer.
    flat_inputs = [x]
    linear_out_dims = []
    for p in params:
        if p[0] == "hidden":
            _, w, b, gamma, beta = p
            flat_inputs.append(w.astype(jnp.bfloat16))
            flat_inputs.append(jnp.concatenate([b, gamma, beta], axis=0))  # (3, hid)
            linear_out_dims.append(w.shape[1])
        else:
            _, w, b = p
            flat_inputs.append(w.astype(jnp.bfloat16))
            flat_inputs.append(b)
            linear_out_dims.append(w.shape[1])

    out_shapes = tuple(
        jax.ShapeDtypeStruct((batch, d), jnp.float32) for d in linear_out_dims
    )

    vmem_spec = pl.BlockSpec(memory_space=pltpu.MemorySpace.VMEM)

    # Explicit VMEM budget: full I/O footprint plus margin, clamped so it is safe
    # from v5e (16 MiB scoped default) up to v7x (64 MiB physical per TC).
    io_bytes = sum(int(a.size) * a.dtype.itemsize for a in flat_inputs)
    io_bytes += sum(
        math.prod(s.shape) * jnp.dtype(s.dtype).itemsize for s in out_shapes
    )
    vmem_limit = min(max(2 * io_bytes + (4 << 20), 16 << 20), 48 << 20)

    results = pl.pallas_call(
        _make_mlp_kernel(num_hidden),
        out_shape=out_shapes,
        in_specs=[vmem_spec] * len(flat_inputs),
        out_specs=tuple([vmem_spec] * len(out_shapes)),
        compiler_params=pltpu.CompilerParams(vmem_limit_bytes=int(vmem_limit)),
    )(*flat_inputs)

    embeddings = {f"layer_{i}": results[i] for i in range(len(linear_out_dims))}
    final = results[-1]  # final output == last embedding (no duplicate store)
    return final, embeddings


def mlp_reference(x, params, matmul_dtype=jnp.float32):
    """Pure-JAX reference. matmul_dtype=bf16 mirrors the kernel's MXU-operand cast."""
    embeddings = {}
    h = x
    layer_idx = 0
    for p in params:
        if p[0] == "hidden":
            _, w, b, gamma, beta = p
            z = jnp.dot(
                h.astype(matmul_dtype),
                w.astype(matmul_dtype),
                preferred_element_type=jnp.float32,
            )
            embeddings[f"layer_{layer_idx}"] = z + b
            layer_idx += 1
            mean = jnp.mean(z, axis=0, keepdims=True)
            var = jnp.maximum(
                jnp.mean(z * z, axis=0, keepdims=True) - mean * mean, 0.0
            )
            h = jnp.maximum(
                (z - mean) * jax.lax.rsqrt(var + BN_EPS) * gamma + beta, 0.0
            )
        else:
            _, w, b = p
            z = (
                jnp.dot(
                    h.astype(matmul_dtype),
                    w.astype(matmul_dtype),
                    preferred_element_type=jnp.float32,
                )
                + b
            )
            embeddings[f"layer_{layer_idx}"] = z
            layer_idx += 1
            h = z
    return h, embeddings


if __name__ == "__main__":
    key = jax.random.PRNGKey(0)
    key, kx, kp = jax.random.split(key, 3)

    # Lane-dense small sizes: feature dims are multiples of 128 (unmasked stores,
    # full MXU column utilization); batch is a sublane multiple.
    batch = 16
    in_channels = 128
    hidden_channels = [128, 128]
    out_channels = 128

    x = jax.random.normal(kx, (batch, in_channels), dtype=jnp.float32)
    params = init_mlp_params(kp, in_channels, hidden_channels, out_channels)

    out, embeddings = mlp_forward(x, params)
    out = jax.block_until_ready(out)
    embeddings = jax.tree_util.tree_map(jax.block_until_ready, embeddings)

    # Check 1: reference with identical math (bf16 MXU operands, f32 accumulate/BN).
    ref_out, ref_emb = mlp_reference(x, params, matmul_dtype=jnp.bfloat16)
    assert jnp.allclose(out, ref_out, atol=5e-3, rtol=5e-3)
    for k in ref_emb:
        assert jnp.allclose(embeddings[k], ref_emb[k], atol=5e-3, rtol=5e-3)

    # Check 2: full-f32 module semantics; loose tolerance covers the intentional
    # bf16 matmul-operand cast (performance optimization).
    ref_out32, _ = mlp_reference(x, params, matmul_dtype=jnp.float32)
    assert jnp.allclose(out, ref_out32, atol=1.5e-1, rtol=1.5e-1)

    print("KERNEL_OK")
</pallas_src>

<mosaic_0001>
module attributes {stable_mosaic.version = 11 : i64} {
  func.func @kernel(%arg0: memref<16x128xf32, #tpu.memory_space<vmem>>, %arg1: memref<128x128xbf16, #tpu.memory_space<vmem>>, %arg2: memref<3x128xf32, #tpu.memory_space<vmem>>, %arg3: memref<128x128xbf16, #tpu.memory_space<vmem>>, %arg4: memref<3x128xf32, #tpu.memory_space<vmem>>, %arg5: memref<128x128xbf16, #tpu.memory_space<vmem>>, %arg6: memref<1x128xf32, #tpu.memory_space<vmem>>, %arg7: memref<16x128xf32, #tpu.memory_space<vmem>>, %arg8: memref<16x128xf32, #tpu.memory_space<vmem>>, %arg9: memref<16x128xf32, #tpu.memory_space<vmem>>) attributes {dimension_semantics = [], scalar_prefetch = 0 : i64, scratch_operands = 0 : i64, tpu.core_type = #tpu.core_type<tc>} {
    %c0 = arith.constant 0 : index
    %c0_0 = arith.constant 0 : index
    %0 = vector.load %arg0[%c0, %c0_0] : memref<16x128xf32, #tpu.memory_space<vmem>>, vector<16x128xf32>
    %1 = arith.truncf %0 : vector<16x128xf32> to vector<16x128xbf16>
    %cst = arith.constant 1.000000e+00 : f32
    %2 = vector.broadcast %cst : f32 to vector<1x16xf32>
    %c0_1 = arith.constant 0 : index
    %c0_2 = arith.constant 0 : index
    %3 = vector.load %arg1[%c0_1, %c0_2] : memref<128x128xbf16, #tpu.memory_space<vmem>>, vector<128x128xbf16>
    %c0_3 = arith.constant 0 : index
    %c0_4 = arith.constant 0 : index
    %4 = vector.load %arg2[%c0_3, %c0_4] : memref<3x128xf32, #tpu.memory_space<vmem>>, vector<3x128xf32>
    %5 = vector.extract_strided_slice %4 {offsets = [0, 0], sizes = [1, 128], strides = [1, 1]} : vector<3x128xf32> to vector<1x128xf32>
    %6 = vector.extract_strided_slice %4 {offsets = [1, 0], sizes = [1, 128], strides = [1, 1]} : vector<3x128xf32> to vector<1x128xf32>
    %7 = vector.extract_strided_slice %4 {offsets = [2, 0], sizes = [1, 128], strides = [1, 1]} : vector<3x128xf32> to vector<1x128xf32>
    %cst_5 = arith.constant dense<0.000000e+00> : vector<16x128xf32>
    %8 = tpu.matmul %1, %3, %cst_5 {dimension_numbers = #tpu.dot_dimension_numbers<[1], [0], [0], [1], [0, 0, 1, 1], [], []>} : vector<16x128xbf16>, vector<128x128xbf16>, vector<16x128xf32> -> vector<16x128xf32>
    %9 = vector.broadcast %5 : vector<1x128xf32> to vector<16x128xf32>
    %10 = arith.addf %8, %9 : vector<16x128xf32>
    %c0_6 = arith.constant 0 : index
    %c0_7 = arith.constant 0 : index
    %11 = vector.load %arg7[%c0_6, %c0_7] : memref<16x128xf32, #tpu.memory_space<vmem>>, vector<16x128xf32>
    tpu.vector_store %arg7[%c0_6, %c0_7], %10 {strides = array<i32>} : memref<16x128xf32, #tpu.memory_space<vmem>>, vector<16x128xf32>,
    %cst_8 = arith.constant dense<0.000000e+00> : vector<1x128xf32>
    %12 = tpu.matmul %2, %8, %cst_8 {dimension_numbers = #tpu.dot_dimension_numbers<[1], [0], [0], [1], [0, 0, 1, 1], [], []>} : vector<1x16xf32>, vector<16x128xf32>, vector<1x128xf32> -> vector<1x128xf32>
    %13 = arith.mulf %8, %8 : vector<16x128xf32>
    %cst_9 = arith.constant dense<0.000000e+00> : vector<1x128xf32>
    %14 = tpu.matmul %2, %13, %cst_9 {dimension_numbers = #tpu.dot_dimension_numbers<[1], [0], [0], [1], [0, 0, 1, 1], [], []>} : vector<1x16xf32>, vector<16x128xf32>, vector<1x128xf32> -> vector<1x128xf32>
    %cst_10 = arith.constant 6.250000e-02 : f32
    %15 = vector.broadcast %cst_10 : f32 to vector<1x128xf32>
    %16 = arith.mulf %12, %15 : vector<1x128xf32>
    %cst_11 = arith.constant 6.250000e-02 : f32
    %17 = vector.broadcast %cst_11 : f32 to vector<1x128xf32>
    %18 = arith.mulf %14, %17 : vector<1x128xf32>
    %19 = arith.mulf %16, %16 : vector<1x128xf32>
    %20 = arith.subf %18, %19 : vector<1x128xf32>
    %cst_12 = arith.constant 0.000000e+00 : f32
    %21 = vector.broadcast %cst_12 : f32 to vector<1x128xf32>
    %22 = arith.maximumf %20, %21 : vector<1x128xf32>
    %23 = vector.broadcast %16 : vector<1x128xf32> to vector<16x128xf32>
    %24 = arith.subf %8, %23 : vector<16x128xf32>
    %cst_13 = arith.constant 9.99999974E-6 : f32
    %25 = vector.broadcast %cst_13 : f32 to vector<1x128xf32>
    %26 = arith.addf %22, %25 : vector<1x128xf32>
    %27 = math.rsqrt %26 : vector<1x128xf32>
    %28 = vector.broadcast %27 : vector<1x128xf32> to vector<16x128xf32>
    %29 = arith.mulf %24, %28 : vector<16x128xf32>
    %30 = vector.broadcast %6 : vector<1x128xf32> to vector<16x128xf32>
    %31 = arith.mulf %29, %30 : vector<16x128xf32>
    %32 = vector.broadcast %7 : vector<1x128xf32> to vector<16x128xf32>
    %33 = arith.addf %31, %32 : vector<16x128xf32>
    %cst_14 = arith.constant 0.000000e+00 : f32
    %34 = vector.broadcast %cst_14 : f32 to vector<16x128xf32>
    %35 = arith.maximumf %33, %34 : vector<16x128xf32>
    %36 = arith.truncf %35 : vector<16x128xf32> to vector<16x128xbf16>
    %c0_15 = arith.constant 0 : index
    %c0_16 = arith.constant 0 : index
    %37 = vector.load %arg3[%c0_15, %c0_16] : memref<128x128xbf16, #tpu.memory_space<vmem>>, vector<128x128xbf16>
    %c0_17 = arith.constant 0 : index
    %c0_18 = arith.constant 0 : index
    %38 = vector.load %arg4[%c0_17, %c0_18] : memref<3x128xf32, #tpu.memory_space<vmem>>, vector<3x128xf32>
    %39 = vector.extract_strided_slice %38 {offsets = [0, 0], sizes = [1, 128], strides = [1, 1]} : vector<3x128xf32> to vector<1x128xf32>
    %40 = vector.extract_strided_slice %38 {offsets = [1, 0], sizes = [1, 128], strides = [1, 1]} : vector<3x128xf32> to vector<1x128xf32>
    %41 = vector.extract_strided_slice %38 {offsets = [2, 0], sizes = [1, 128], strides = [1, 1]} : vector<3x128xf32> to vector<1x128xf32>
    %cst_19 = arith.constant dense<0.000000e+00> : vector<16x128xf32>
    %42 = tpu.matmul %36, %37, %cst_19 {dimension_numbers = #tpu.dot_dimension_numbers<[1], [0], [0], [1], [0, 0, 1, 1], [], []>} : vector<16x128xbf16>, vector<128x128xbf16>, vector<16x128xf32> -> vector<16x128xf32>
    %43 = vector.broadcast %39 : vector<1x128xf32> to vector<16x128xf32>
    %44 = arith.addf %42, %43 : vector<16x128xf32>
    %c0_20 = arith.constant 0 : index
    %c0_21 = arith.constant 0 : index
    %45 = vector.load %arg8[%c0_20, %c0_21] : memref<16x128xf32, #tpu.memory_space<vmem>>, vector<16x128xf32>
    tpu.vector_store %arg8[%c0_20, %c0_21], %44 {strides = array<i32>} : memref<16x128xf32, #tpu.memory_space<vmem>>, vector<16x128xf32>,
    %cst_22 = arith.constant dense<0.000000e+00> : vector<1x128xf32>
    %46 = tpu.matmul %2, %42, %cst_22 {dimension_numbers = #tpu.dot_dimension_numbers<[1], [0], [0], [1], [0, 0, 1, 1], [], []>} : vector<1x16xf32>, vector<16x128xf32>, vector<1x128xf32> -> vector<1x128xf32>
    %47 = arith.mulf %42, %42 : vector<16x128xf32>
    %cst_23 = arith.constant dense<0.000000e+00> : vector<1x128xf32>
    %48 = tpu.matmul %2, %47, %cst_23 {dimension_numbers = #tpu.dot_dimension_numbers<[1], [0], [0], [1], [0, 0, 1, 1], [], []>} : vector<1x16xf32>, vector<16x128xf32>, vector<1x128xf32> -> vector<1x128xf32>
    %cst_24 = arith.constant 6.250000e-02 : f32
    %49 = vector.broadcast %cst_24 : f32 to vector<1x128xf32>
    %50 = arith.mulf %46, %49 : vector<1x128xf32>
    %cst_25 = arith.constant 6.250000e-02 : f32
    %51 = vector.broadcast %cst_25 : f32 to vector<1x128xf32>
    %52 = arith.mulf %48, %51 : vector<1x128xf32>
    %53 = arith.mulf %50, %50 : vector<1x128xf32>
    %54 = arith.subf %52, %53 : vector<1x128xf32>
    %cst_26 = arith.constant 0.000000e+00 : f32
    %55 = vector.broadcast %cst_26 : f32 to vector<1x128xf32>
    %56 = arith.maximumf %54, %55 : vector<1x128xf32>
    %57 = vector.broadcast %50 : vector<1x128xf32> to vector<16x128xf32>
    %58 = arith.subf %42, %57 : vector<16x128xf32>
    %cst_27 = arith.constant 9.99999974E-6 : f32
    %59 = vector.broadcast %cst_27 : f32 to vector<1x128xf32>
    %60 = arith.addf %56, %59 : vector<1x128xf32>
    %61 = math.rsqrt %60 : vector<1x128xf32>
    %62 = vector.broadcast %61 : vector<1x128xf32> to vector<16x128xf32>
    %63 = arith.mulf %58, %62 : vector<16x128xf32>
    %64 = vector.broadcast %40 : vector<1x128xf32> to vector<16x128xf32>
    %65 = arith.mulf %63, %64 : vector<16x128xf32>
    %66 = vector.broadcast %41 : vector<1x128xf32> to vector<16x128xf32>
    %67 = arith.addf %65, %66 : vector<16x128xf32>
    %cst_28 = arith.constant 0.000000e+00 : f32
    %68 = vector.broadcast %cst_28 : f32 to vector<16x128xf32>
    %69 = arith.maximumf %67, %68 : vector<16x128xf32>
    %70 = arith.truncf %69 : vector<16x128xf32> to vector<16x128xbf16>
    %c0_29 = arith.constant 0 : index
    %c0_30 = arith.constant 0 : index
    %71 = vector.load %arg5[%c0_29, %c0_30] : memref<128x128xbf16, #tpu.memory_space<vmem>>, vector<128x128xbf16>
    %c0_31 = arith.constant 0 : index
    %c0_32 = arith.constant 0 : index
    %72 = vector.load %arg6[%c0_31, %c0_32] : memref<1x128xf32, #tpu.memory_space<vmem>>, vector<1x128xf32>
    %cst_33 = arith.constant dense<0.000000e+00> : vector<16x128xf32>
    %73 = tpu.matmul %70, %71, %cst_33 {dimension_numbers = #tpu.dot_dimension_numbers<[1], [0], [0], [1], [0, 0, 1, 1], [], []>} : vector<16x128xbf16>, vector<128x128xbf16>, vector<16x128xf32> -> vector<16x128xf32>
    %74 = vector.broadcast %72 : vector<1x128xf32> to vector<16x128xf32>
    %75 = arith.addf %73, %74 : vector<16x128xf32>
    %c0_34 = arith.constant 0 : index
    %c0_35 = arith.constant 0 : index
    %76 = vector.load %arg9[%c0_34, %c0_35] : memref<16x128xf32, #tpu.memory_space<vmem>>, vector<16x128xf32>
    tpu.vector_store %arg9[%c0_34, %c0_35], %75 {strides = array<i32>} : memref<16x128xf32, #tpu.memory_space<vmem>>, vector<16x128xf32>,
    return
  }
}

</mosaic_0001>

<bundles_post_ra>
// kernel: tpu_custom_call.1
= control target key start
LH: loop header
LB: loop body
LE: loop exit
PB: predicated region body
PF: predicated region fallthrough
CT: control target
= control target key end

     0   :  { %15 = vsyncpa [#allocation3], 0  ;;  %s1489_s0 = inlined_call_operand.hbm [shape: f32[16,128], index: 0, kind: input, shape index: {}]   ;;  %s1490_s1 = inlined_call_operand.hbm [shape: bf16[128,128], index: 1, kind: input, shape index: {}]   ;;  %s1491_s2 = inlined_call_operand.vmem [shape: f32[3,128], index: 2, kind: input, shape index: {}]   ;;  %s1492_s3 = inlined_call_operand.hbm [shape: bf16[128,128], index: 3, kind: input, shape index: {}]   ;;  %s1493_s4 = inlined_call_operand.vmem [shape: f32[3,128], index: 4, kind: input, shape index: {}]   ;;  %s1494_s5 = inlined_call_operand.hbm [shape: bf16[128,128], index: 5, kind: input, shape index: {}]   ;;  %s1495_s6 = inlined_call_operand.vmem [shape: f32[1,128], index: 6, kind: input, shape index: {}]   ;;  %s1496_s7 = inlined_call_operand.hbm [shape: f32[16,128], index: 7, kind: output, shape index: {0}]   ;;  %s1497_s8 = inlined_call_operand.hbm [shape: f32[16,128], index: 8, kind: output, shape index: {1}]   ;;  %s1498_s9 = inlined_call_operand.hbm [shape: f32[16,128], index: 9, kind: output, shape index: {2}]  }
   0x1   :  { %16 = vsyncpa [#allocation6], 0 }
   0x2   :  { %17 = vsyncpa [#allocation9], 0 }
   0x3   :  { %18 = vsyncpa [#allocation4], 0 }
   0x4   :  { %19 = vsyncpa [#allocation12], 0  ;;  %s1213_s30 = smov [#allocation5]   ;;  %s1049_s13 = scalar_lea.hbm %s1490_s1, 1024 }
   0x5   :  { %s37_s10 = sshll.u32 %s1213_s30, 4  ;;  %p1050_p0 = scmp.ne.s32.totalorder %s1490_s1, %s1049_s13  ;;  %s38_s10 = int_to_ptr.vmem [resolvable:$true] %s37_s10 }
   0x6   :  { %p1053_p1 = scmp.lt.u32.totalorder %s1049_s13, %s1490_s1 }
   0x8   :  { %p1055_p2 = pnand %p1053_p1, %p1050_p0 }
   0xa   :  { %1058 = shalt.err (!%p1055_p2)
}
   0xb   :  { %s1059_s18 = scalar_lea.vmem %s38_s10, 1024  ;;  %p1064_p4 = scmp.lt.s32.totalorder %s38_s10, %s38_s10 }
   0xc   :  { %p1060_p3 = scmp.ne.s32.totalorder %s38_s10, %s1059_s18  ;;  %p1065_p5 = scmp.lt.s32.totalorder %s1059_s18, %s1059_s18 }
   0xe   :  { %p1066_p6 = por %p1065_p5, %p1064_p4 }
  0x10   :  { %p1067_p7 = pnand %p1066_p6, %p1060_p3 }
  0x12   :  { %1070 = shalt.err (!%p1067_p7)
}
  0x13   :  { %s1214_s19 = smov 64   ;;  %s1215_s20 = smov 4  }
  0x14   :  { %43 = dma.hbm_to_vmem [thread:$0]  %s1490_s1, 1024, %s38_s10, [#allocation6], %s1214_s19, %s1214_s19, %s1215_s20  }
  0x15   :  { %s1216_s23 = smov [#allocation2]   ;;  %s1071_s27 = scalar_lea.hbm %s1489_s0, 256 }
  0x16   :  { %s25_s24 = sshll.u32 %s1216_s23, 4  ;;  %p1072_p8 = scmp.ne.s32.totalorder %s1489_s0, %s1071_s27  ;;  %s26_s24 = int_to_ptr.vmem [resolvable:$true] %s25_s24 }
  0x17   :  { %p1075_p9 = scmp.lt.u32.totalorder %s1071_s27, %s1489_s0 }
  0x19   :  { %p1077_p10 = pnand %p1075_p9, %p1072_p8 }
  0x1b   :  { %1080 = shalt.err (!%p1077_p10)
}
  0x1c   :  { %s1081_s12 = scalar_lea.vmem %s26_s24, 256  ;;  %p1086_p12 = scmp.lt.s32.totalorder %s26_s24, %s26_s24 }
  0x1d   :  { %p1082_p11 = scmp.ne.s32.totalorder %s26_s24, %s1081_s12  ;;  %p1087_p13 = scmp.lt.s32.totalorder %s1081_s12, %s1081_s12 }
  0x1f   :  { %p1088_p0 = por %p1087_p13, %p1086_p12 }
  0x21   :  { %p1089_p1 = pnand %p1088_p0, %p1082_p11 }
  0x23   :  { %1092 = shalt.err (!%p1089_p1)
}
  0x24   :  { %s1217_s1 = smov 128   ;;  %s1218_s10 = smov 8  }
  0x25   :  { %31 = dma.hbm_to_vmem [thread:$0]  %s1489_s0, 256, %s26_s24, [#allocation3], %s1217_s1, %s1217_s1, %s1218_s10  }
  0x26   :  { %s1219_s15 = smov [#allocation7]   ;;  %s1220_s17 = smov [#allocation8]  }
  0x27   :  { %s51_s16 = sshll.u32 %s1219_s15, 4  ;;  %s65_s18 = sshll.u32 %s1220_s17, 4  ;;  %s52_s16 = int_to_ptr.vmem [resolvable:$true] %s51_s16  ;;  %s1308_s18 = int_to_ptr.vmem [resolvable:$true] %s65_s18 }
  0x28   :  { %s1093_s23 = scalar_lea.hbm %s1492_s3, 1024 }
  0x29   :  { %p1094_p2 = scmp.ne.s32.totalorder %s1492_s3, %s1093_s23  ;;  %p1097_p3 = scmp.lt.u32.totalorder %s1093_s23, %s1492_s3 }
  0x2b   :  { %p1099_p4 = pnand %p1097_p3, %p1094_p2 }
  0x2d   :  { %1102 = shalt.err (!%p1099_p4)
}
  0x2e   :  { %s1103_s0 = scalar_lea.vmem %s52_s16, 1024  ;;  %p1108_p6 = scmp.lt.s32.totalorder %s52_s16, %s52_s16 }
  0x2f   :  { %p1104_p5 = scmp.ne.s32.totalorder %s52_s16, %s1103_s0  ;;  %p1109_p7 = scmp.lt.s32.totalorder %s1103_s0, %s1103_s0 }
  0x31   :  { %p1110_p8 = por %p1109_p7, %p1108_p6 }
  0x33   :  { %p1111_p9 = pnand %p1110_p8, %p1104_p5 }
  0x35   :  { %1114 = shalt.err (!%p1111_p9)
}
  0x36   :  { %57 = dma.hbm_to_vmem [thread:$0]  %s1492_s3, 1024, %s52_s16, [#allocation6], %s1214_s19, %s1214_s19, %s1215_s20  }
  0x37   :  { %s1115_s12 = scalar_lea.hbm %s1494_s5, 1024 }
  0x38   :  { %p1116_p10 = scmp.ne.s32.totalorder %s1494_s5, %s1115_s12  ;;  %p1119_p11 = scmp.lt.u32.totalorder %s1115_s12, %s1494_s5 }
  0x3a   :  { %p1121_p12 = pnand %p1119_p11, %p1116_p10 }
  0x3c   :  { %1124 = shalt.err (!%p1121_p12)
}
  0x3d   :  { %s1125_s21 = scalar_lea.vmem %s1308_s18, 1024  ;;  %p1130_p0 = scmp.lt.s32.totalorder %s1308_s18, %s1308_s18 }
  0x3e   :  { %p1126_p13 = scmp.ne.s32.totalorder %s1308_s18, %s1125_s21  ;;  %p1131_p1 = scmp.lt.s32.totalorder %s1125_s21, %s1125_s21 }
  0x40   :  { %p1132_p2 = por %p1131_p1, %p1130_p0 }
  0x42   :  { %p1133_p3 = pnand %p1132_p2, %p1126_p13 }
  0x44   :  { %1136 = shalt.err (!%p1133_p3)
}
  0x45   :  { %71 = dma.hbm_to_vmem [thread:$0]  %s1494_s5, 1024, %s1308_s18, [#allocation9], %s1214_s19, %s1214_s19, %s1215_s20  }
  0x46   :  { %1203 = dma.done.wait [#allocation3], 256  }
  0x47   :  { %1204 = vsyncadd [#allocation3], 4294967040 }
  0x48   :  { %1205 = dma.done.wait [#allocation6], 2048  }
  0x49   :  { %1206 = vsyncadd [#allocation6], 4294965248 }
  0x4a   :  { %1207 = dma.done.wait [#allocation9], 1024  }
  0x4b   :  { %1208 = vsyncadd [#allocation9], 4294966272  ;;  %v1221_v0 = vmov 0.0   ;;  %vm1222_vm0 = vmmov 0   ;;  %v1021_v1 = vld [vmem:[#allocation5] sm:$0xff]   ;;  %v1022_v2 = vld [vmem:[#allocation5 + $0x8] sm:$0xff]   ;;  %v196_v13 = vlaneseq }
  0x4c   :  { %906 = vmatprep.subr.bf16.mxu0 %v1221_v0  ;;  %922 = vmatprep.mubr.msk.bf16.mxu0 %vm1222_vm0, %v1221_v0  ;;  %v1023_v3 = vld [vmem:[#allocation5 + $0x10] sm:$0xff]   ;;  %v1024_v4 = vld [vmem:[#allocation5 + $0x18] sm:$0xff]   ;;  %v1025_v5 = vld [vmem:[#allocation5 + $0x20] sm:$0xff]   ;;  %v1223_v12 = vmov 0.0|0.0   ;;  %vm204_vm1 = vcmask 130048   ;;  %v1224_v28 = vmov 1.0  }
  0x4d   :  { %940 = vmatprep.subr.bf16.mxu1 %v1221_v0  ;;  %956 = vmatprep.mubr.msk.bf16.mxu1 %vm1222_vm0, %v1221_v0  ;;  %v1026_v6 = vld [vmem:[#allocation5 + $0x28] sm:$0xff]   ;;  %v1027_v7 = vld [vmem:[#allocation5 + $0x30] sm:$0xff]   ;;  %v1028_v8 = vld [vmem:[#allocation5 + $0x38] sm:$0xff]   ;;  %v1361_v14 = vshrl.u32 %v196_v13, 7  ;;  %s1226_s22 = smov [#allocation10]  }
  0x4e   :  { %907 = vmatpush3.bf16.msra.mxu0 %v1021_v1  ;;  %v87_v9 = vld [vmem:[#allocation2] sm:$0xff]  ;;  %v88_v10 = vld [vmem:[#allocation2 + $0x8] sm:$0xff]  ;;  %v1029_v29 = vld [vmem:[#allocation7] sm:$0xff]   ;;  %s793_s23 = sshll.u32 %s1226_s22, 4  ;;  %s794_s23 = int_to_ptr.vmem [resolvable:$true] %s793_s23 }
  0x4f   :  { %908 = vmatprep.subr.bf16.mxu0 %v1221_v0  ;;  %v89_v11 = vpack.c.bf16 %v88_v10, %v87_v9  ;;  %v1364_v15 = vsub.s32 0, %v1361_v14  ;;  %v1369_v16 = vld [vmem:[%s1491_s2] sm:$0x7]  ;;  %941 = vmatpush3.bf16.msra.mxu1 %v1029_v29  ;;  %v1030_v30 = vld [vmem:[#allocation7 + $0x8] sm:$0xff]   ;;  %v1032_v32 = vld [vmem:[#allocation7 + $0x18] sm:$0xff]   ;;  %v371_v50 = vsub.s32 1, %v1361_v14 }
  0x50   :  { %942 = vmatprep.subr.bf16.mxu1 %v1221_v0  ;;  %v1031_v31 = vld [vmem:[#allocation7 + $0x10] sm:$0xff]   ;;  %v1033_v33 = vld [vmem:[#allocation7 + $0x20] sm:$0xff]   ;;  %v1034_v34 = vld [vmem:[#allocation7 + $0x28] sm:$0xff]   ;;  %v377_v51 = vsub.s32 2, %v1361_v14 }
  0x51   :  { %v199_v17 = vrot.slane %v1369_v16, %v1364_v15  ;;  %v1035_v35 = vld [vmem:[#allocation7 + $0x30] sm:$0xff]   ;;  %v1036_v36 = vld [vmem:[#allocation7 + $0x38] sm:$0xff]   ;;  %v372_v54 = vrot.slane %v1369_v16, %v371_v50 }
  0x52   :  { %909 = vmatpush3.bf16.msra.mxu0 %v1022_v2  ;;  %v378_v57 = vrot.slane %v1369_v16, %v377_v51  ;;  %v400_v2 = vld [vmem:[%s1493_s4] sm:$0x7]  ;;  %s1225_s4 = smov [#allocation11]  }
  0x53   :  { %910 = vmatprep.subr.bf16.mxu0 %v1221_v0  ;;  %943 = vmatpush3.bf16.msra.mxu1 %v1030_v30  ;;  %s805_s18 = sshll.u32 %s1225_s4, 4  ;;  %s806_s18 = int_to_ptr.vmem [resolvable:$true] %s805_s18 }
  0x54   :  { %944 = vmatprep.subr.bf16.mxu1 %v1221_v0  ;;  %s1137_s25 = scalar_lea.vmem %s806_s18, 256  ;;  %p1142_p5 = scmp.lt.s32.totalorder %s806_s18, %s806_s18 }
  0x55   :  { %p1138_p4 = scmp.ne.s32.totalorder %s806_s18, %s1137_s25  ;;  %p1143_p6 = scmp.lt.s32.totalorder %s1137_s25, %s1137_s25 }
  0x56   :  { %911 = vmatpush3.bf16.msra.mxu0 %v1023_v3  ;;  %v493_v3 = vrot.slane %v400_v2, %v1364_v15 }
  0x57   :  { %912 = vmatprep.subr.bf16.mxu0 %v1221_v0  ;;  %945 = vmatpush3.bf16.msra.mxu1 %v1031_v31  ;;  %p1144_p7 = por %p1143_p6, %p1142_p5 }
  0x58   :  { %946 = vmatprep.subr.bf16.mxu1 %v1221_v0 }
  0x59   :  { %p1145_p8 = pnand %p1144_p7, %p1138_p4 }
  0x5a   :  { %913 = vmatpush3.bf16.msra.mxu0 %v1024_v4 }
  0x5b   :  { %914 = vmatprep.subr.bf16.mxu0 %v1221_v0  ;;  %947 = vmatpush3.bf16.msra.mxu1 %v1032_v32 }
  0x5c   :  { %948 = vmatprep.subr.bf16.mxu1 %v1221_v0 }
  0x5e   :  { %915 = vmatpush3.bf16.msra.mxu0 %v1025_v5 }
  0x5f   :  { %916 = vmatprep.subr.bf16.mxu0 %v1221_v0  ;;  %949 = vmatpush3.bf16.msra.mxu1 %v1033_v33 }
  0x60   :  { %950 = vmatprep.subr.bf16.mxu1 %v1221_v0 }
  0x62   :  { %917 = vmatpush3.bf16.msra.mxu0 %v1026_v6 }
  0x63   :  { %918 = vmatprep.subr.bf16.mxu0 %v1221_v0  ;;  %951 = vmatpush3.bf16.msra.mxu1 %v1034_v34 }
  0x64   :  { %952 = vmatprep.subr.bf16.mxu1 %v1221_v0 }
  0x66   :  { %919 = vmatpush3.bf16.msra.mxu0 %v1027_v7 }
  0x67   :  { %920 = vmatprep.subr.bf16.mxu0 %v1221_v0  ;;  %953 = vmatpush3.bf16.msra.mxu1 %v1035_v35 }
  0x68   :  { %954 = vmatprep.subr.bf16.mxu1 %v1221_v0 }
  0x6a   :  { %921 = vmatpush3.bf16.msra.mxu0 %v1028_v8 }
  0x6b   :  { %994 = vmatprep.subr.bf16.mxu0 %v1223_v12  ;;  %955 = vmatpush3.bf16.msra.mxu1 %v1036_v36 }
  0x6c   :  { %974 = vmatprep.subr.bf16.mxu1 %v1221_v0 }
  0x6d   :  { %923 = vmatmul.mubr.bf16.vlgmr.msra.gmra.mrb[0].mxu0 %v89_v11 }
  0x6e   :  { %930 = vmatprep.mubr.msk.f32.mxu0 %vm1222_vm0, %v1221_v0 }
 0x140   :  { %v1373_v18 = vpop.f32.mrb[0].mxu0 }
 0x141   :  { %v924_v19 = vpop.f32.mrb[1].mxu0  ;;  %v200_v20 = vadd.f32 %v199_v17, %v1373_v18  ;;  %v278_v22 = vmul.f32 %v1373_v18, %v1373_v18 }
 0x142   :  { %v1376_v21 = vpop.f32.mrb[2].mxu0  ;;  %v1039_v19 = vld [vmem:[#allocation8 + $0x10] sm:$0xff]  }
 0x143   :  { %v995_v23 = vpack.c.bf16 %v1376_v21, %v1373_v18  ;;  %v279_v24 = vmul.f32 %v1376_v21, %v1376_v21  ;;  %v925_v25 = vpop.f32.mrb[3].mxu0  ;;  %v201_v26 = vadd.f32 %v199_v17, %v1376_v21  ;;  %202 = vst [vmem:[#allocation10] sm:$0xff] %v200_v20  ;;  %v1037_v17 = vld [vmem:[#allocation8] sm:$0xff]  }
 0x144   :  { %v1041_v20 = vld [vmem:[#allocation8 + $0x20] sm:$0xff]  }
 0x145   :  { %996 = vmatpush3.bf16.msra.mxu0 %v995_v23  ;;  %v998_v27 = vpack.c.bf16 %v279_v24, %v278_v22  ;;  %203 = vst [vmem:[#allocation10 + $0x8] sm:$0xff] %v201_v26  ;;  %v1043_v22 = vld [vmem:[#allocation8 + $0x30] sm:$0xff]   ;;  %v1044_v23 = vld [vmem:[#allocation8 + $0x38] sm:$0xff]  }
 0x146   :  { %997 = vmatprep.subr.bf16.mxu0 %v1223_v12 }
 0x148   :  { %931 = vmatmul.mubr.msk.f32.vlgmr.msra.gmra.mrb[4].mxu0 %vm204_vm1, %v1224_v28 }
 0x149   :  { %999 = vmatpush3.bf16.msra.mxu0 %v998_v27  ;;  %937 = vmatprep.mubr.msk.f32.mxu0 %vm1222_vm0, %v1221_v0 }
 0x14a   :  { %1000 = vmatprep.subr.bf16.mxu0 %v1223_v12 }
 0x14c   :  { %938 = vmatmul.mubr.msk.f32.vlgmr.msra.gmra.mrb[6].mxu0 %vm204_vm1, %v1224_v28 }
 0x14d   :  { %964 = vmatprep.mubr.msk.f32.mxu0 %vm1222_vm0, %v1221_v0 }
 0x21b   :  { %v274_v37 = vpop.f32.mrb[4].mxu0 }
 0x21c   :  { %v350_v38 = vmul.f32 0.0625, %v274_v37  ;;  %v932_v39 = vpop.f32.mrb[5].mxu0 }
 0x21e   :  { %v358_v40 = vrot.slane %v350_v38, %v1364_v15  ;;  %v352_v42 = vmul.f32 %v350_v38, %v350_v38 }
 0x21f   :  { %v346_v41 = vpop.f32.mrb[6].mxu0 }
 0x220   :  { %v359_v43 = vsub.f32 %v1373_v18, %v358_v40  ;;  %v360_v44 = vsub.f32 %v1376_v21, %v358_v40  ;;  %v351_v45 = vmul.f32 0.0625, %v346_v41  ;;  %v939_v46 = vpop.f32.mrb[7].mxu0  ;;  %v1038_v18 = vld [vmem:[#allocation8 + $0x8] sm:$0xff]   ;;  %v668_v41 = vrot.slane %v400_v2, %v377_v51 }
 0x221   :  { %v1042_v21 = vld [vmem:[#allocation8 + $0x28] sm:$0xff]  }
 0x222   :  { %v353_v47 = vsub.f32 %v351_v45, %v352_v42 }
 0x224   :  { %v354_v48 = vmax.f32 %v353_v47, 0.0 }
 0x226   :  { %v361_v49 = vadd.f32 1e-05, %v354_v48 }
 0x228   :  { %1045 = vrsqrt.f32 %v361_v49 }
 0x232   :  { %v1046_v52 = vpop.eup %1045 }
 0x233   :  { %v366_v53 = vrot.slane %v1046_v52, %v1364_v15 }
 0x235   :  { %v367_v55 = vmul.f32 %v366_v53, %v359_v43  ;;  %v368_v56 = vmul.f32 %v366_v53, %v360_v44 }
 0x237   :  { %v373_v58 = vmul.f32 %v372_v54, %v367_v55  ;;  %v374_v59 = vmul.f32 %v372_v54, %v368_v56 }
 0x239   :  { %v379_v60 = vadd.f32 %v378_v57, %v373_v58  ;;  %v380_v61 = vadd.f32 %v378_v57, %v374_v59 }
 0x23b   :  { %v381_v62 = vmax.f32 %v379_v60, 0.0  ;;  %v382_v63 = vmax.f32 %v380_v61, 0.0 }
 0x23d   :  { %v383_v1 = vpack.c.bf16 %v382_v63, %v381_v62 }
 0x23f   :  { %957 = vmatmul.mubr.bf16.vlgmr.msra.gmra.mrb[0].mxu1 %v383_v1 }
 0x240   :  { %990 = vmatprep.mubr.msk.bf16.mxu1 %vm1222_vm0, %v1221_v0  ;;  %975 = vmatpush3.bf16.msra.mxu1 %v1037_v17 }
 0x241   :  { %976 = vmatprep.subr.bf16.mxu1 %v1221_v0 }
 0x244   :  { %977 = vmatpush3.bf16.msra.mxu1 %v1038_v18 }
 0x245   :  { %978 = vmatprep.subr.bf16.mxu1 %v1221_v0 }
 0x248   :  { %979 = vmatpush3.bf16.msra.mxu1 %v1039_v19 }
 0x249   :  { %980 = vmatprep.subr.bf16.mxu1 %v1221_v0 }
 0x312   :  { %v483_v4 = vpop.f32.mrb[0].mxu1 }
 0x313   :  { %v958_v5 = vpop.f32.mrb[1].mxu1  ;;  %v494_v6 = vadd.f32 %v493_v3, %v483_v4  ;;  %v568_v8 = vmul.f32 %v483_v4, %v483_v4 }
 0x314   :  { %v486_v7 = vpop.f32.mrb[2].mxu1 }
 0x315   :  { %v1001_v9 = vpack.c.bf16 %v486_v7, %v483_v4  ;;  %v569_v10 = vmul.f32 %v486_v7, %v486_v7  ;;  %v959_v11 = vpop.f32.mrb[3].mxu1  ;;  %v495_v13 = vadd.f32 %v493_v3, %v486_v7  ;;  %496 = vst [vmem:[#allocation11] sm:$0xff] %v494_v6 }
 0x317   :  { %1002 = vmatpush3.bf16.msra.mxu0 %v1001_v9  ;;  %v1004_v16 = vpack.c.bf16 %v569_v10, %v568_v8  ;;  %497 = vst [vmem:[#allocation11 + $0x8] sm:$0xff] %v495_v13 }
 0x318   :  { %1003 = vmatprep.subr.bf16.mxu0 %v1223_v12  ;;  %v1040_v12 = vld [vmem:[#allocation8 + $0x18] sm:$0xff]  }
 0x319   :  { %981 = vmatpush3.bf16.msra.mxu1 %v1040_v12 }
 0x31a   :  { %965 = vmatmul.mubr.msk.f32.vlgmr.msra.gmra.mrb[8].mxu0 %vm204_vm1, %v1224_v28  ;;  %982 = vmatprep.subr.bf16.mxu1 %v1221_v0 }
 0x31b   :  { %1005 = vmatpush3.bf16.msra.mxu0 %v1004_v16  ;;  %971 = vmatprep.mubr.msk.f32.mxu0 %vm1222_vm0, %v1221_v0 }
 0x31d   :  { %983 = vmatpush3.bf16.msra.mxu1 %v1041_v20 }
 0x31e   :  { %972 = vmatmul.mubr.msk.f32.vlgmr.msra.gmra.mrb[10].mxu0 %vm204_vm1, %v1224_v28  ;;  %984 = vmatprep.subr.bf16.mxu1 %v1221_v0 }
 0x321   :  { %985 = vmatpush3.bf16.msra.mxu1 %v1042_v21 }
 0x322   :  { %986 = vmatprep.subr.bf16.mxu1 %v1221_v0 }
 0x325   :  { %987 = vmatpush3.bf16.msra.mxu1 %v1043_v22 }
 0x326   :  { %988 = vmatprep.subr.bf16.mxu1 %v1221_v0  ;;  %v662_v0 = vrot.slane %v400_v2, %v371_v50 }
 0x329   :  { %989 = vmatpush3.bf16.msra.mxu1 %v1044_v23 }
 0x3ed   :  { %v564_v24 = vpop.f32.mrb[8].mxu0 }
 0x3ee   :  { %v640_v25 = vmul.f32 0.0625, %v564_v24  ;;  %v966_v26 = vpop.f32.mrb[9].mxu0 }
 0x3f0   :  { %v648_v27 = vrot.slane %v640_v25, %v1364_v15  ;;  %v642_v29 = vmul.f32 %v640_v25, %v640_v25 }
 0x3f1   :  { %v636_v28 = vpop.f32.mrb[10].mxu0 }
 0x3f2   :  { %v649_v30 = vsub.f32 %v483_v4, %v648_v27  ;;  %v650_v31 = vsub.f32 %v486_v7, %v648_v27  ;;  %v641_v32 = vmul.f32 0.0625, %v636_v28  ;;  %v973_v33 = vpop.f32.mrb[11].mxu0 }
 0x3f4   :  { %v643_v34 = vsub.f32 %v641_v32, %v642_v29 }
 0x3f6   :  { %v644_v35 = vmax.f32 %v643_v34, 0.0 }
 0x3f8   :  { %v651_v36 = vadd.f32 1e-05, %v644_v35 }
 0x3fa   :  { %1047 = vrsqrt.f32 %v651_v36 }
 0x404   :  { %v1048_v37 = vpop.eup %1047 }
 0x405   :  { %v656_v38 = vrot.slane %v1048_v37, %v1364_v15 }
 0x407   :  { %v657_v39 = vmul.f32 %v656_v38, %v649_v30  ;;  %v658_v40 = vmul.f32 %v656_v38, %v650_v31 }
 0x409   :  { %v663_v42 = vmul.f32 %v662_v0, %v657_v39  ;;  %v664_v43 = vmul.f32 %v662_v0, %v658_v40 }
 0x40b   :  { %v669_v44 = vadd.f32 %v668_v41, %v663_v42  ;;  %v670_v45 = vadd.f32 %v668_v41, %v664_v43 }
 0x40d   :  { %v671_v46 = vmax.f32 %v669_v44, 0.0  ;;  %v672_v47 = vmax.f32 %v670_v45, 0.0 }
 0x40f   :  { %v673_v48 = vpack.c.bf16 %v672_v47, %v671_v46 }
 0x411   :  { %991 = vmatmul.mubr.bf16.vlgmr.msra.gmra.mrb[4].mxu1 %v673_v48 }
 0x412   :  { %1148 = shalt.err (!%p1145_p8)
}
 0x413   :  { %s1149_s28 = scalar_lea.hbm %s1497_s8, 256 }
 0x414   :  { %p1150_p9 = scmp.ne.s32.totalorder %s1497_s8, %s1149_s28  ;;  %p1153_p10 = scmp.lt.u32.totalorder %s1149_s28, %s1497_s8 }
 0x416   :  { %p1155_p11 = pnand %p1153_p10, %p1150_p9 }
 0x418   :  { %1158 = shalt.err (!%p1155_p11)
}
 0x419   :  { %811 = dma.vmem_to_hbm [thread:$0]  %s806_s18, 256, %s1497_s8, [#allocation12], %s1217_s1, %s1217_s1, %s1218_s10  }
 0x41a   :  { %s1159_s13 = scalar_lea.vmem %s794_s23, 256  ;;  %p1164_p13 = scmp.lt.s32.totalorder %s794_s23, %s794_s23 }
 0x41b   :  { %p1160_p12 = scmp.ne.s32.totalorder %s794_s23, %s1159_s13  ;;  %p1165_p0 = scmp.lt.s32.totalorder %s1159_s13, %s1159_s13 }
 0x41d   :  { %p1166_p1 = por %p1165_p0, %p1164_p13 }
 0x41f   :  { %p1167_p2 = pnand %p1166_p1, %p1160_p12 }
 0x421   :  { %1170 = shalt.err (!%p1167_p2)
}
 0x422   :  { %s1171_s17 = scalar_lea.hbm %s1496_s7, 256 }
 0x423   :  { %p1172_p3 = scmp.ne.s32.totalorder %s1496_s7, %s1171_s17  ;;  %p1175_p4 = scmp.lt.u32.totalorder %s1171_s17, %s1496_s7 }
 0x425   :  { %p1177_p5 = pnand %p1175_p4, %p1172_p3 }
 0x427   :  { %1180 = shalt.err (!%p1177_p5)
}
 0x428   :  { %799 = dma.vmem_to_hbm [thread:$0]  %s794_s23, 256, %s1496_s7, [#allocation4], %s1217_s1, %s1217_s1, %s1218_s10  }
 0x429   :  { %v858_v14 = vld [vmem:[%s1495_s6] ss:$0 sm:$0xff]  ;;  %s1227_s4 = smov [#allocation13]  }
 0x42a   :  { %s817_s18 = sshll.u32 %s1227_s4, 4  ;;  %s818_s18 = int_to_ptr.vmem [resolvable:$true] %s817_s18 }
 0x42b   :  { %s1181_s22 = scalar_lea.vmem %s818_s18, 256  ;;  %p1186_p7 = scmp.lt.s32.totalorder %s818_s18, %s818_s18 }
 0x42c   :  { %p1182_p6 = scmp.ne.s32.totalorder %s818_s18, %s1181_s22  ;;  %p1187_p8 = scmp.lt.s32.totalorder %s1181_s22, %s1181_s22 }
 0x42e   :  { %p1188_p9 = por %p1187_p8, %p1186_p7 }
 0x430   :  { %p1189_p10 = pnand %p1188_p9, %p1182_p6 }
 0x4e4   :  { %v779_v15 = vpop.f32.mrb[4].mxu1 }
 0x4e5   :  { %v780_v49 = vadd.f32 %v858_v14, %v779_v15  ;;  %v992_v50 = vpop.f32.mrb[5].mxu1 }
 0x4e6   :  { %v782_v51 = vpop.f32.mrb[6].mxu1 }
 0x4e7   :  { %786 = vst [vmem:[#allocation13] sm:$0xff] %v780_v49  ;;  %v783_v52 = vadd.f32 %v858_v14, %v782_v51  ;;  %v993_v53 = vpop.f32.mrb[7].mxu1 }
 0x4e9   :  { %787 = vst [vmem:[#allocation13 + $0x8] sm:$0xff] %v783_v52 }
 0x4ea   :  { %1192 = shalt.err (!%p1189_p10)
}
 0x4eb   :  { %s1193_s23 = scalar_lea.hbm %s1498_s9, 256 }
 0x4ec   :  { %p1194_p11 = scmp.ne.s32.totalorder %s1498_s9, %s1193_s23  ;;  %p1197_p12 = scmp.lt.u32.totalorder %s1193_s23, %s1498_s9 }
 0x4ee   :  { %p1199_p13 = pnand %p1197_p12, %p1194_p11 }
 0x4f0   :  { %1202 = shalt.err (!%p1199_p13)
}
 0x4f1   :  { %823 = dma.vmem_to_hbm [thread:$0]  %s818_s18, 256, %s1498_s9, [#allocation12], %s1217_s1, %s1217_s1, %s1218_s10  }
 0x4f2   :  { %1209 = dma.done.wait [#allocation4], 256  }
 0x4f3   :  { %1210 = vsyncadd [#allocation4], 4294967040 }
 0x4f4   :  { %1211 = dma.done.wait [#allocation12], 512  }
 0x4f5   :  { %1212 = vsyncadd [#allocation12], 4294966784 }
 0x4f6   :  { %833 = vsyncpa [#allocation3], 1 }
 0x4f7   :  { %834 = vsyncpa [#allocation6], 1 }
 0x4f8   :  { %835 = vsyncpa [#allocation9], 1 }
 0x4f9   :  { %836 = vsyncpa [#allocation4], 1 }
 0x4fa   :  { %837 = vsyncpa [#allocation12], 1 }

</bundles_post_ra>
